<compile_context>
chip_gen: v7x
topology: tpu7x:2x2x1
jax: 0.10.0
libtpu: 0.0.40
codegen_flags: <defaults>
</compile_context>

<pallas_src>
import jax
import jax.numpy as jnp
from jax.experimental import pallas as pl
from jax.experimental.pallas import tpu as pltpu


def _dyt_kernel(alpha_ref, x_ref, scale_ref, shift_ref, o_ref):
    # alpha_ref: (1, 1) scalar in SMEM
    # x_ref / o_ref: (TM, HW); scale_ref / shift_ref: (TM, 1)
    alpha = alpha_ref[0, 0]
    x = x_ref[...].astype(jnp.float32)
    y = jnp.tanh(x * alpha)  # EUP transcendental
    o_ref[...] = (scale_ref[...] * y + shift_ref[...]).astype(o_ref.dtype)


def _pick_row_tile(nc, hw, itemsize, target_bytes=2 * 1024 * 1024, max_tm=1024):
    """Largest row tile <= max_tm whose x-block is ~target_bytes; sublane-aligned."""
    tm = max(1, target_bytes // max(1, hw * itemsize))
    tm = min(tm, max_tm, nc)
    if tm < nc:
        # keep (sublane, lane) alignment: multiple of 16 covers f32 and bf16
        tm = max(16, (tm // 16) * 16)
    return tm


def dyt_block_pallas(x, alpha, scale, shift):
    """DyTBlock forward: scale * tanh(alpha * x) + shift.

    x: (N, C, H, W); alpha: (1, 1, 1, 1); scale, shift: (1, C, 1, 1).
    Returns (N, C, H, W) in x.dtype.
    """
    N, C, H, W = x.shape
    NC, HW = N * C, H * W

    # glue: flatten to rows; per-row channel params (tiny, NC*4 bytes each)
    x2d = x.reshape(NC, HW)
    scale_rows = (
        jnp.broadcast_to(scale.reshape(1, C), (N, C)).reshape(NC, 1).astype(jnp.float32)
    )
    shift_rows = (
        jnp.broadcast_to(shift.reshape(1, C), (N, C)).reshape(NC, 1).astype(jnp.float32)
    )
    alpha_s = alpha.reshape(1, 1).astype(jnp.float32)

    tm = _pick_row_tile(NC, HW, x.dtype.itemsize)
    grid = (pl.cdiv(NC, tm),)

    cost = pl.CostEstimate(
        flops=3 * NC * HW,
        transcendentals=NC * HW,
        bytes_accessed=2 * NC * HW * x.dtype.itemsize,
    )

    out2d = pl.pallas_call(
        _dyt_kernel,
        out_shape=jax.ShapeDtypeStruct((NC, HW), x.dtype),
        grid=grid,
        in_specs=[
            pl.BlockSpec(memory_space=pltpu.MemorySpace.SMEM),  # alpha scalar
            pl.BlockSpec((tm, HW), lambda i: (i, 0)),           # x row tile
            pl.BlockSpec((tm, 1), lambda i: (i, 0)),            # scale rows
            pl.BlockSpec((tm, 1), lambda i: (i, 0)),            # shift rows
        ],
        out_specs=pl.BlockSpec((tm, HW), lambda i: (i, 0)),
        compiler_params=pltpu.CompilerParams(
            dimension_semantics=("parallel",),  # row tiles are independent
        ),
        cost_estimate=cost,
    )(alpha_s, x2d, scale_rows, shift_rows)

    return out2d.reshape(N, C, H, W)


def dyt_block_reference(x, alpha, scale, shift):
    """Pure-JAX reference mirroring the PyTorch DyTBlock exactly."""
    return scale * jnp.tanh(alpha * x) + shift


if __name__ == "__main__":
    key = jax.random.PRNGKey(0)
    kx, ks, kb = jax.random.split(key, 3)

    N, C, H, W = 2, 4, 16, 16  # small NCHW input

    x = jax.random.normal(kx, (N, C, H, W), dtype=jnp.float32)

    # alpha matches nn.Parameter(torch.ones(1,1,1,1) * 0.5); scale/shift are
    # deterministic non-trivial values to exercise the affine path.
    alpha = jnp.full((1, 1, 1, 1), 0.5, dtype=jnp.float32)
    scale = 1.0 + 0.1 * jax.random.normal(ks, (1, C, 1, 1), dtype=jnp.float32)
    shift = 0.1 * jax.random.normal(kb, (1, C, 1, 1), dtype=jnp.float32)

    out = dyt_block_pallas(x, alpha, scale, shift)
    out = jax.block_until_ready(out)

    ref = dyt_block_reference(x, alpha, scale, shift)

    assert out.shape == (N, C, H, W)
    assert jnp.allclose(out, ref, atol=1e-5, rtol=1e-5), "mismatch vs reference"

    print("KERNEL_OK")
</pallas_src>

<mosaic_0001>
module attributes {stable_mosaic.version = 11 : i64} {
  func.func @_dyt_kernel(%arg0: i32, %arg1: memref<1x1xf32, #tpu.memory_space<smem>>, %arg2: memref<8x256xf32, #tpu.memory_space<vmem>>, %arg3: memref<8x1xf32, #tpu.memory_space<vmem>>, %arg4: memref<8x1xf32, #tpu.memory_space<vmem>>, %arg5: memref<8x256xf32, #tpu.memory_space<vmem>>) attributes {dimension_semantics = [#tpu.dimension_semantics<parallel>], iteration_bounds = array<i64: 1>, scalar_prefetch = 0 : i64, scratch_operands = 0 : i64, tpu.core_type = #tpu.core_type<tc>, window_params = [{transform_indices = @transform_0, window_bounds = array<i64: 1, 1>}, {transform_indices = @transform_1, window_bounds = array<i64: 8, 256>}, {transform_indices = @transform_2, window_bounds = array<i64: 8, 1>}, {transform_indices = @transform_3, window_bounds = array<i64: 8, 1>}, {transform_indices = @transform_4, window_bounds = array<i64: 8, 256>}]} {
    %c0 = arith.constant 0 : index
    %c0_0 = arith.constant 0 : index
    %0 = memref.load %arg1[%c0, %c0_0] : memref<1x1xf32, #tpu.memory_space<smem>>
    %c0_1 = arith.constant 0 : index
    %c0_2 = arith.constant 0 : index
    %1 = vector.load %arg2[%c0_1, %c0_2] : memref<8x256xf32, #tpu.memory_space<vmem>>, vector<8x256xf32>
    %2 = vector.broadcast %0 : f32 to vector<8x256xf32>
    %3 = arith.mulf %1, %2 : vector<8x256xf32>
    %4 = math.tanh %3 : vector<8x256xf32>
    %c0_3 = arith.constant 0 : index
    %c0_4 = arith.constant 0 : index
    %5 = vector.load %arg3[%c0_3, %c0_4] : memref<8x1xf32, #tpu.memory_space<vmem>>, vector<8x1xf32>
    %6 = vector.broadcast %5 : vector<8x1xf32> to vector<8x256xf32>
    %7 = arith.mulf %6, %4 : vector<8x256xf32>
    %c0_5 = arith.constant 0 : index
    %c0_6 = arith.constant 0 : index
    %8 = vector.load %arg4[%c0_5, %c0_6] : memref<8x1xf32, #tpu.memory_space<vmem>>, vector<8x1xf32>
    %9 = vector.broadcast %8 : vector<8x1xf32> to vector<8x256xf32>
    %10 = arith.addf %7, %9 : vector<8x256xf32>
    %c0_7 = arith.constant 0 : index
    %c0_8 = arith.constant 0 : index
    %11 = vector.load %arg5[%c0_7, %c0_8] : memref<8x256xf32, #tpu.memory_space<vmem>>, vector<8x256xf32>
    tpu.vector_store %arg5[%c0_7, %c0_8], %10 {strides = array<i32>} : memref<8x256xf32, #tpu.memory_space<vmem>>, vector<8x256xf32>,
    return
  }
  func.func @transform_0(%arg0: i32) -> (i32, i32) {
    %c0_i32 = arith.constant 0 : i32
    %c0_i32_0 = arith.constant 0 : i32
    %c0_i32_1 = arith.constant 0 : i32
    return %c0_i32, %c0_i32_0 : i32, i32
  }
  func.func @transform_1(%arg0: i32) -> (i32, i32) {
    %c0_i32 = arith.constant 0 : i32
    %c0_i32_0 = arith.constant 0 : i32
    return %arg0, %c0_i32 : i32, i32
  }
  func.func @transform_2(%arg0: i32) -> (i32, i32) {
    %c0_i32 = arith.constant 0 : i32
    %c0_i32_0 = arith.constant 0 : i32
    return %arg0, %c0_i32 : i32, i32
  }
  func.func @transform_3(%arg0: i32) -> (i32, i32) {
    %c0_i32 = arith.constant 0 : i32
    %c0_i32_0 = arith.constant 0 : i32
    return %arg0, %c0_i32 : i32, i32
  }
  func.func @transform_4(%arg0: i32) -> (i32, i32) {
    %c0_i32 = arith.constant 0 : i32
    %c0_i32_0 = arith.constant 0 : i32
    return %arg0, %c0_i32 : i32, i32
  }
}

</mosaic_0001>

<bundles_post_ra>
// kernel: tpu_custom_call.1
= control target key start
LH: loop header
LB: loop body
LE: loop exit
PB: predicated region body
PF: predicated region fallthrough
CT: control target
= control target key end

     0   :  { %v90_v1 = vmov 0   ;;  %s144_s0 = inlined_call_operand.<no memory space> [shape: f32[1,1], index: 0, kind: input, shape index: {}]   ;;  %s145_s1 = inlined_call_operand.vmem [shape: f32[8,256], index: 1, kind: input, shape index: {}]   ;;  %s146_s2 = inlined_call_operand.vmem [shape: f32[8,1], index: 2, kind: input, shape index: {}]   ;;  %s147_s3 = inlined_call_operand.vmem [shape: f32[8,1], index: 3, kind: input, shape index: {}]   ;;  %s148_s4 = inlined_call_operand.hbm [shape: f32[8,256], index: 4, kind: output, shape index: {}]  }
   0x1   :  { %v27_v0 = vld [vmem:[%s146_s2] sm:$0xff]  ;;  %61 = vset.pattern.permute.xlu0 %v90_v1 }
   0x2   :  { %10 = vsyncpa [#allocation4], 0  ;;  %30 = vperm.xlu0 %61, %v27_v0   ;;  %v35_v2 = vld [vmem:[%s147_s3] sm:$0xff]  ;;  %v22_v4 = vstv %s144_s0  ;;  %v21_v5 = vld [vmem:[%s145_s1 + $0x8] sm:$0xff]  ;;  %s91_s2 = smov [#allocation3]  }
   0x3   :  { %v20_v3 = vld [vmem:[%s145_s1] sm:$0xff]  ;;  %v24_v7 = vmul.f32 %v22_v4, %v21_v5  ;;  %s51_s3 = sshll.u32 %s91_s2, 4  ;;  %s52_s3 = int_to_ptr.vmem [resolvable:$true] %s51_s3 }
   0x4   :  { %v23_v6 = vmul.f32 %v22_v4, %v20_v3  ;;  %s66_s0 = scalar_lea.vmem %s52_s3, 256  ;;  %p71_p1 = scmp.lt.s32.totalorder %s52_s3, %s52_s3 }
   0x5   :  { %p67_p0 = scmp.ne.s32.totalorder %s52_s3, %s66_s0  ;;  %p72_p2 = scmp.lt.s32.totalorder %s66_s0, %s66_s0 }
   0x6   :  { %38 = vperm.xlu0 %61, %v35_v2   ;;  %62 = vtanh.f32 %v23_v6 }
   0x7   :  { %64 = vtanh.f32 %v24_v7  ;;  %p73_p3 = por %p72_p2, %p71_p1 }
   0x9   :  { %p74_p4 = pnand %p73_p3, %p67_p0 }
  0x10   :  { %v63_v8 = vpop.eup %62 }
  0x11   :  { %v65_v9 = vpop.eup %64 }
  0x81   :  { %v31_v10 = vpop.permute.xlu0 %30 }
  0x82   :  { %v33_v11 = vmul.f32 %v63_v8, %v31_v10  ;;  %v34_v12 = vmul.f32 %v65_v9, %v31_v10 }
  0x85   :  { %v39_v13 = vpop.permute.xlu0 %38 }
  0x86   :  { %v41_v14 = vadd.f32 %v39_v13, %v33_v11  ;;  %v42_v15 = vadd.f32 %v39_v13, %v34_v12 }
  0x88   :  { %43 = vst [vmem:[#allocation3] sm:$0xff] %v41_v14  ;;  %44 = vst [vmem:[#allocation3 + $0x8] sm:$0xff] %v42_v15 }
  0x89   :  { %77 = shalt.err (!%p74_p4)
}
  0x8a   :  { %s78_s26 = scalar_lea.hbm %s148_s4, 256 }
  0x8b   :  { %p79_p5 = scmp.ne.s32.totalorder %s148_s4, %s78_s26  ;;  %p82_p6 = scmp.lt.u32.totalorder %s78_s26, %s148_s4 }
  0x8d   :  { %p84_p7 = pnand %p82_p6, %p79_p5 }
  0x8f   :  { %87 = shalt.err (!%p84_p7)
}
  0x90   :  { %54 = dma.vmem_to_hbm [thread:$0]  %s52_s3, 256, %s148_s4, [#allocation4]  }
  0x91   :  { %88 = dma.done.wait [#allocation4], 256  }
  0x92   :  { %89 = vsyncadd [#allocation4], 4294967040 }
  0x93   :  { %58 = vsyncpa [#allocation4], 1 }

</bundles_post_ra>
